<compile_context>
chip_gen: v5e
topology: v5e:2x2
jax: 0.10.0
libtpu: 0.0.40
codegen_flags: <defaults>
</compile_context>

<pallas_src>
import jax
import jax.numpy as jnp
from jax import lax
from jax.experimental import pallas as pl
from jax.experimental.pallas import tpu as pltpu

SIG_B = 1.0
SIG_W = 1.0
DIN = 1.0
# Hoisted scalar constants (folded at trace time).
_C_B = SIG_B * SIG_B
_C_W = SIG_W / DIN


def gauss_net_kernel(x_ref, w1_ref, b1_ref, w2_ref, b2_ref, o_ref):
    x = x_ref[...]                                                # (TB, I)

    # fc1 on the MXU: contract x(TB, I) with w1(H, I) over I (torch layout, no
    # wrapper transpose needed), f32 accumulate.
    z = lax.dot_general(
        x, w1_ref[...],
        dimension_numbers=(((1,), (1,)), ((), ())),
        preferred_element_type=jnp.float32,
    ) + b1_ref[...]                                               # (TB, H)

    # Fused Gauss activation:
    #   exp(z) / sqrt(exp(2*(C_B + C_W*x^2))) == exp(z - C_B - C_W*x^2)
    # (exact algebraic identity; single EUP exp, no divide, no overflow of the
    #  intermediate exponentials). Broadcast requires I == H.
    g = jnp.exp(z - _C_B - _C_W * (x * x))                        # (TB, H)

    # fc2 on the MXU: contract g(TB, H) with w2(O, H) over H.
    o_ref[...] = lax.dot_general(
        g, w2_ref[...],
        dimension_numbers=(((1,), (1,)), ((), ())),
        preferred_element_type=jnp.float32,
    ) + b2_ref[...]                                               # (TB, O)


def gauss_net_forward(x, w1, b1, w2, b2, *, tile_b=128):
    """x: (B, I); w1: (H, I) torch layout; b1: (H,); w2: (O, H); b2: (O,)."""
    B, I = x.shape
    H = w1.shape[0]
    O = w2.shape[0]
    # The Gauss activation divides a (B, H) tensor by a (B, I) tensor.
    assert I == H, "Gauss_Net forward requires input_size == hidden_size"

    # Glue only: lift biases to 2-D rows (no weight transposes / copies).
    b1_2d = b1.reshape(1, H)
    b2_2d = b2.reshape(1, O)

    tb = min(tile_b, B)
    grid = (pl.cdiv(B, tb),)

    return pl.pallas_call(
        gauss_net_kernel,
        out_shape=jax.ShapeDtypeStruct((B, O), jnp.float32),
        grid_spec=pltpu.PrefetchScalarGridSpec(
            num_scalar_prefetch=0,
            grid=grid,
            in_specs=[
                # Batch-tiled activations, double-buffered by the pipeline.
                pl.BlockSpec((tb, I), lambda i: (i, 0)),
                # Weights / biases: constant index_map -> VMEM-resident across
                # all grid steps (no steady-state weight DMA).
                pl.BlockSpec((H, I), lambda i: (0, 0)),
                pl.BlockSpec((1, H), lambda i: (0, 0)),
                pl.BlockSpec((O, H), lambda i: (0, 0)),
                pl.BlockSpec((1, O), lambda i: (0, 0)),
            ],
            out_specs=pl.BlockSpec((tb, O), lambda i: (i, 0)),
        ),
        compiler_params=pltpu.CompilerParams(
            # Batch steps are independent -> shards across both TCs on v7x;
            # harmless on v5e/v6e.
            dimension_semantics=("parallel",),
        ),
    )(x, w1, b1_2d, w2, b2_2d)


def gauss_net_reference(x, w1, b1, w2, b2):
    # Literal torch expression (unfused) as the correctness oracle.
    z = x @ w1.T + b1
    num = jnp.exp(z)
    den = jnp.sqrt(jnp.exp(2.0 * (SIG_B ** 2 + (SIG_W / DIN) * x ** 2)))
    g = num / den
    return g @ w2.T + b2


if __name__ == "__main__":
    # Small shapes consistent with the module (input_size == hidden_size).
    B, I, H, O = 8, 32, 32, 16

    key = jax.random.PRNGKey(0)
    kx, kw1, kb1, kw2, kb2 = jax.random.split(key, 5)

    x = jax.random.normal(kx, (B, I), dtype=jnp.float32)
    # Deterministic init mirroring nn.init.normal_ calls in __init__:
    w1 = jax.random.normal(kw1, (H, I), dtype=jnp.float32) * 1.0           # std=1
    b1 = jax.random.normal(kb1, (H,), dtype=jnp.float32) * 1.0             # std=1
    w2 = jax.random.normal(kw2, (O, H), dtype=jnp.float32) / jnp.sqrt(H)   # std=1/sqrt(H)
    b2 = jax.random.normal(kb2, (O,), dtype=jnp.float32) * 1.0             # std=1

    out = gauss_net_forward(x, w1, b1, w2, b2)
    out = jax.block_until_ready(out)

    ref = gauss_net_reference(x, w1, b1, w2, b2)
    assert out.shape == (B, O)
    assert jnp.allclose(out, ref, rtol=1e-4, atol=1e-4), "kernel mismatch vs reference"

    print("KERNEL_OK")
</pallas_src>

<mosaic_0001>
module attributes {stable_mosaic.version = 11 : i64} {
  func.func @gauss_net_kernel(%arg0: i32, %arg1: memref<8x32xf32, #tpu.memory_space<vmem>>, %arg2: memref<32x32xf32, #tpu.memory_space<vmem>>, %arg3: memref<1x32xf32, #tpu.memory_space<vmem>>, %arg4: memref<16x32xf32, #tpu.memory_space<vmem>>, %arg5: memref<1x16xf32, #tpu.memory_space<vmem>>, %arg6: memref<8x16xf32, #tpu.memory_space<vmem>>) attributes {dimension_semantics = [#tpu.dimension_semantics<parallel>], iteration_bounds = array<i64: 1>, scalar_prefetch = 0 : i64, scratch_operands = 0 : i64, tpu.core_type = #tpu.core_type<tc>, window_params = [{transform_indices = @transform_0, window_bounds = array<i64: 8, 32>}, {pipeline_mode = #tpu.pipeline_mode<synchronous>, transform_indices = @transform_1, window_bounds = array<i64: 32, 32>}, {pipeline_mode = #tpu.pipeline_mode<synchronous>, transform_indices = @transform_2, window_bounds = array<i64: 1, 32>}, {pipeline_mode = #tpu.pipeline_mode<synchronous>, transform_indices = @transform_3, window_bounds = array<i64: 16, 32>}, {pipeline_mode = #tpu.pipeline_mode<synchronous>, transform_indices = @transform_4, window_bounds = array<i64: 1, 16>}, {transform_indices = @transform_5, window_bounds = array<i64: 8, 16>}]} {
    %c0 = arith.constant 0 : index
    %c0_0 = arith.constant 0 : index
    %0 = vector.load %arg1[%c0, %c0_0] : memref<8x32xf32, #tpu.memory_space<vmem>>, vector<8x32xf32>
    %c0_1 = arith.constant 0 : index
    %c0_2 = arith.constant 0 : index
    %1 = vector.load %arg2[%c0_1, %c0_2] : memref<32x32xf32, #tpu.memory_space<vmem>>, vector<32x32xf32>
    %cst = arith.constant dense<0.000000e+00> : vector<8x32xf32>
    %2 = tpu.matmul %0, %1, %cst {dimension_numbers = #tpu.dot_dimension_numbers<[1], [1], [0], [0], [0, 0, 1, 0], [], []>} : vector<8x32xf32>, vector<32x32xf32>, vector<8x32xf32> -> vector<8x32xf32>
    %c0_3 = arith.constant 0 : index
    %c0_4 = arith.constant 0 : index
    %3 = vector.load %arg3[%c0_3, %c0_4] : memref<1x32xf32, #tpu.memory_space<vmem>>, vector<1x32xf32>
    %4 = vector.broadcast %3 : vector<1x32xf32> to vector<8x32xf32>
    %5 = arith.addf %2, %4 : vector<8x32xf32>
    %cst_5 = arith.constant 1.000000e+00 : f32
    %6 = vector.broadcast %cst_5 : f32 to vector<8x32xf32>
    %7 = arith.subf %5, %6 : vector<8x32xf32>
    %8 = arith.mulf %0, %0 : vector<8x32xf32>
    %cst_6 = arith.constant 1.000000e+00 : f32
    %9 = vector.broadcast %cst_6 : f32 to vector<8x32xf32>
    %10 = arith.mulf %9, %8 : vector<8x32xf32>
    %11 = arith.subf %7, %10 : vector<8x32xf32>
    %12 = math.exp %11 : vector<8x32xf32>
    %c0_7 = arith.constant 0 : index
    %c0_8 = arith.constant 0 : index
    %13 = vector.load %arg4[%c0_7, %c0_8] : memref<16x32xf32, #tpu.memory_space<vmem>>, vector<16x32xf32>
    %cst_9 = arith.constant dense<0.000000e+00> : vector<8x16xf32>
    %14 = tpu.matmul %12, %13, %cst_9 {dimension_numbers = #tpu.dot_dimension_numbers<[1], [1], [0], [0], [0, 0, 1, 0], [], []>} : vector<8x32xf32>, vector<16x32xf32>, vector<8x16xf32> -> vector<8x16xf32>
    %c0_10 = arith.constant 0 : index
    %c0_11 = arith.constant 0 : index
    %15 = vector.load %arg5[%c0_10, %c0_11] : memref<1x16xf32, #tpu.memory_space<vmem>>, vector<1x16xf32>
    %16 = vector.broadcast %15 : vector<1x16xf32> to vector<8x16xf32>
    %17 = arith.addf %14, %16 : vector<8x16xf32>
    %c0_12 = arith.constant 0 : index
    %c0_13 = arith.constant 0 : index
    %18 = vector.load %arg6[%c0_12, %c0_13] : memref<8x16xf32, #tpu.memory_space<vmem>>, vector<8x16xf32>
    tpu.vector_store %arg6[%c0_12, %c0_13], %17 {strides = array<i32>} : memref<8x16xf32, #tpu.memory_space<vmem>>, vector<8x16xf32>,
    return
  }
  func.func @transform_0(%arg0: i32) -> (i32, i32) {
    %c0_i32 = arith.constant 0 : i32
    %c0_i32_0 = arith.constant 0 : i32
    return %arg0, %c0_i32 : i32, i32
  }
  func.func @transform_1(%arg0: i32) -> (i32, i32) {
    %c0_i32 = arith.constant 0 : i32
    %c0_i32_0 = arith.constant 0 : i32
    %c0_i32_1 = arith.constant 0 : i32
    return %c0_i32, %c0_i32_0 : i32, i32
  }
  func.func @transform_2(%arg0: i32) -> (i32, i32) {
    %c0_i32 = arith.constant 0 : i32
    %c0_i32_0 = arith.constant 0 : i32
    %c0_i32_1 = arith.constant 0 : i32
    return %c0_i32, %c0_i32_0 : i32, i32
  }
  func.func @transform_3(%arg0: i32) -> (i32, i32) {
    %c0_i32 = arith.constant 0 : i32
    %c0_i32_0 = arith.constant 0 : i32
    %c0_i32_1 = arith.constant 0 : i32
    return %c0_i32, %c0_i32_0 : i32, i32
  }
  func.func @transform_4(%arg0: i32) -> (i32, i32) {
    %c0_i32 = arith.constant 0 : i32
    %c0_i32_0 = arith.constant 0 : i32
    %c0_i32_1 = arith.constant 0 : i32
    return %c0_i32, %c0_i32_0 : i32, i32
  }
  func.func @transform_5(%arg0: i32) -> (i32, i32) {
    %c0_i32 = arith.constant 0 : i32
    %c0_i32_0 = arith.constant 0 : i32
    return %arg0, %c0_i32 : i32, i32
  }
}

</mosaic_0001>

<bundles_post_ra>
// kernel: tpu_custom_call.1
= control target key start
LH: loop header
LB: loop body
LE: loop exit
PB: predicated region body
PF: predicated region fallthrough
CT: control target
= control target key end

     0   :  { %10 = vsyncpa [#allocation3], 0  ;;  %s354_s0 = inlined_call_operand.hbm [shape: f32[8,32], index: 0, kind: input, shape index: {}]   ;;  %s355_s1 = inlined_call_operand.hbm [shape: f32[32,32], index: 1, kind: input, shape index: {}]   ;;  %s356_s2 = inlined_call_operand.vmem [shape: f32[1,32], index: 2, kind: input, shape index: {}]   ;;  %s357_s3 = inlined_call_operand.hbm [shape: f32[16,32], index: 3, kind: input, shape index: {}]   ;;  %s358_s4 = inlined_call_operand.vmem [shape: f32[1,16], index: 4, kind: input, shape index: {}]   ;;  %s359_s5 = inlined_call_operand.hbm [shape: f32[8,16], index: 5, kind: output, shape index: {}]  }
   0x1   :  { %11 = vsyncpa [#allocation6], 0  ;;  %s28_s20 = sshll.u32 %s355_s1, 4  ;;  %s29_s20 = int_to_ptr.hbm [resolvable:$true] %s28_s20 }
   0x2   :  { %12 = vsyncpa [#allocation4], 0  ;;  %s292_s21 = smov [#allocation5]   ;;  %s18_s25 = sshll.u32 %s354_s0, 4  ;;  %s19_s25 = int_to_ptr.hbm [resolvable:$true] %s18_s25 }
   0x3   :  { %s30_s22 = sshll.u32 %s292_s21, 4  ;;  %s293_s26 = smov 128   ;;  %s31_s22 = int_to_ptr.vmem [resolvable:$true] %s30_s22 }
   0x4   :  { %s294_s27 = smov 8   ;;  %s295_s28 = smov [#allocation2]  }
   0x5   :  { %36 = dma.hbm_to_vmem [thread:$0]  %s29_s20, 512, %s31_s22, [#allocation6], %s293_s26, %s293_s26, %s294_s27  }
   0x6   :  { %s20_s29 = sshll.u32 %s295_s28, 4  ;;  %s43_s7 = sshll.u32 %s357_s3, 4  ;;  %s21_s29 = int_to_ptr.vmem [resolvable:$true] %s20_s29  ;;  %s44_s7 = int_to_ptr.hbm [resolvable:$true] %s43_s7 }
   0x7   :  { %23 = dma.hbm_to_vmem [thread:$0]  %s19_s25, 128, %s21_s29, [#allocation3]  }
   0x8   :  { %s296_s1 = smov [#allocation7]  }
   0x9   :  { %s45_s8 = sshll.u32 %s296_s1, 4  ;;  %s46_s8 = int_to_ptr.vmem [resolvable:$true] %s45_s8 }
   0xa   :  { %51 = dma.hbm_to_vmem [thread:$0]  %s44_s7, 256, %s46_s8, [#allocation6], %s293_s26, %s293_s26, %s294_s27  }
   0xb   :  { %286 = dma.done.wait [#allocation3], 128  }
   0xc   :  { %287 = vsyncadd [#allocation3], 4294967168 }
   0xd   :  { %288 = dma.done.wait [#allocation6], 768  }
   0xe   :  { %289 = vsyncadd [#allocation6], 4294966528  ;;  %vm75_vm0 = vcmask 261120   ;;  %v70_v0 = vld [vmem:[#allocation5 + $0x18] sm:$0xff]  ;;  %v69_v1 = vld [vmem:[#allocation5 + $0x10] sm:$0xff]  ;;  %s297_s11 = smov [#allocation8]  }
   0xf   :  { %171 = vmatpush.xpose.msk.msra.mxu0 %vm75_vm0, %v70_v0  ;;  %v68_v2 = vld [vmem:[#allocation5 + $0x8] sm:$0xff]  ;;  %v67_v3 = vld [vmem:[#allocation5] sm:$0xff]  ;;  %v66_v4 = vld [vmem:[#allocation2] sm:$0xff]  ;;  %s158_s12 = sshll.u32 %s297_s11, 4  ;;  %vm151_vm1 = vcmask 130048   ;;  %s159_s12 = int_to_ptr.vmem [resolvable:$true] %s158_s12 }
  0x10   :  { %v117_v5 = vld [vmem:[#allocation7 + $0x8] sm:$0xff]  ;;  %v116_v6 = vld [vmem:[#allocation7] sm:$0xff]  ;;  %v186_v7 = vld [vmem:[%s356_s2] ss:$0 sm:$0xff]  ;;  %v112_v9 = vmul.f32 %v66_v4, %v66_v4  ;;  %s160_s2 = sshll.u32 %s359_s5, 4  ;;  %s161_s2 = int_to_ptr.hbm [resolvable:$true] %s160_s2 }
  0x11   :  { %177 = vmatpush.xpose.msk.msra.mxu1 %vm75_vm0, %v117_v5  ;;  %v187_v15 = vld [vmem:[%s358_s4] ss:$0 sm:$0xff] }
  0x13   :  { %172 = vmatpush.xpose.msk.msra.mxu0 %vm75_vm0, %v69_v1 }
  0x15   :  { %178 = vmatpush.xpose.msk.msra.mxu1 %vm75_vm0, %v116_v6 }
  0x17   :  { %173 = vmatpush.xpose.msk.msra.mxu0 %vm75_vm0, %v68_v2 }
  0x1b   :  { %174 = vmatpush.xpose.msk.msra.mxu0 %vm75_vm0, %v67_v3 }
  0x1e   :  { %175 = vmatmul.msk.f32.vlgmr.msra.gmra.mxu0 %vm75_vm0, %v66_v4 }
  0x9b   :  { %v108_v8 = vpop.f32.mrf.mxu0 }
  0x9c   :  { %v109_v10 = vadd.f32 %v186_v7, %v108_v8 }
  0x9e   :  { %v176_v11 = vadd.f32 -1.0, %v109_v10 }
  0xa0   :  { %v113_v12 = vsub.f32 %v176_v11, %v112_v9 }
  0xa2   :  { %v114_v13 = vmul.f32 1.442695, %v113_v12 }
  0xa4   :  { %188 = vpow2.f32 %v114_v13 }
  0xaa   :  { %v189_v14 = vpop.eup %188 }
  0xab   :  { %179 = vmatmul.msk.f32.vlgmr.msra.gmra.mxu1 %vm75_vm0, %v189_v14 }
 0x128   :  { %v148_v16 = vpop.f32.mrf.mxu1 }
 0x129   :  { %v149_v17 = vadd.f32 %v187_v15, %v148_v16 }
 0x12b   :  { %152 = vst.msk [vmem:[#allocation8] sm:$0xff] %vm151_vm1, %v149_v17 }
 0x12c   :  { %163 = dma.vmem_to_hbm [thread:$0]  %s159_s12, 128, %s161_s2, [#allocation4]  }
 0x12d   :  { %290 = dma.done.wait [#allocation4], 128  }
 0x12e   :  { %291 = vsyncadd [#allocation4], 4294967168 }
 0x12f   :  { %168 = vsyncpa [#allocation3], 1 }
 0x130   :  { %169 = vsyncpa [#allocation6], 1 }
 0x131   :  { %170 = vsyncpa [#allocation4], 1 }

</bundles_post_ra>
